<compile_context>
chip_gen: v6e
topology: v6e:2x2x1
jax: 0.10.0
libtpu: 0.0.40
codegen_flags: <defaults>
</compile_context>

<pallas_src>
import math

import jax
import jax.numpy as jnp
from jax.experimental import pallas as pl
from jax.experimental.pallas import tpu as pltpu


def _round_up(x: int, m: int) -> int:
    return (x + m - 1) // m * m


def make_positional_encoding(d_model: int, max_len: int = 5000, dtype=jnp.float32):
    """Build the sine/cosine table exactly like the PyTorch __init__.

    Returns a 2-D [round_up(max_len, 16), d_model] buffer: the singleton batch
    dim is squeezed out (lane/sublane-dense blocks, contiguous DMA), the rows
    are padded to a sublane multiple (so ragged seq tiles never run past the
    buffer), and the cast to the model dtype happens ONCE here.
    """
    assert d_model % 2 == 0, "d_model must be even (same limitation as the PyTorch module)"
    rows = _round_up(max_len, 16)
    position = jnp.arange(rows, dtype=jnp.float32)[:, None]                 # [rows, 1]
    div_term = jnp.exp(
        jnp.arange(0, d_model, 2, dtype=jnp.float32) * (-math.log(10000.0) / d_model)
    )                                                                       # [d_model/2]
    pe = jnp.zeros((rows, d_model), dtype=jnp.float32)
    pe = pe.at[:, 0::2].set(jnp.sin(position * div_term))
    pe = pe.at[:, 1::2].set(jnp.cos(position * div_term))
    return pe.astype(dtype)


def _pe_add_kernel(x_ref, pe_ref, o_ref):
    # x_ref: (ts, B, D); pe_ref: (ts, D) -> broadcast pe over the batch dim.
    o_ref[...] = x_ref[...] + pe_ref[...][:, None, :]


def _scoped_vmem_limit_bytes() -> int:
    """min(64 MiB, physical VMEM / 2): 64 MiB on v5e/v6e, 32 MiB on v7x."""
    try:
        phys = pltpu.get_tpu_info().vmem_capacity_bytes
        return int(min(64 * 1024 * 1024, phys // 2))
    except Exception:
        return 32 * 1024 * 1024  # safe everywhere (v7x physical VMEM is 64 MiB)


def _choose_seq_tile(S: int, B: int, D: int, itemsize: int,
                     vmem_limit_bytes: int, pe_len: int) -> int:
    """Pick a seq tile from the full double-buffered VMEM-padded resident set.

    Resident set per grid step = x block + pe block + out block; Pallas
    double-buffers each, so the budget is ~75% of the scoped VMEM limit over
    twice that sum. Small B / D inflate the on-chip footprint via (sublane,128)
    padding, so we size against the *padded* bytes.
    """
    packing = max(1, 4 // max(1, itemsize))          # elems per 32-bit sublane word
    sub = 8 * packing                                # sublane multiple for this dtype
    x_row = _round_up(B, sub) * _round_up(D, 128) * itemsize   # per seq row, x/out block
    pe_row = _round_up(D, 128) * itemsize                       # per seq row, pe block
    per_row = 2 * (2 * x_row + pe_row)               # double-buffered x + out + pe
    budget = int(vmem_limit_bytes * 0.75)
    tile = max(sub, (budget // per_row) // sub * sub)

    if S > 4 * sub:
        # Keep >= 4 grid steps (>= 2 per TensorCore on dual-TC v7x) so the
        # pipeline always has a prefetch/writeback to overlap with compute.
        tile = min(tile, _round_up(pl.cdiv(S, 4), sub))
    else:
        tile = min(tile, _round_up(S, sub))

    # Never let the last (ragged) pe block nominally extend past the pe buffer.
    while pl.cdiv(S, tile) * tile > pe_len and tile > sub:
        tile -= sub
    if pl.cdiv(S, tile) * tile > pe_len:
        tile = S   # single exact block (only reachable for unpadded user pe buffers)
    return int(max(tile, 1))


def positional_encoding_forward(x, pe, *, seq_tile=None, donate_x=False):
    """x: [S, B, D]; pe: [padded_max_len, D] (or legacy [max_len, 1, D]), model dtype.

    Returns x + pe[:S] broadcast over batch (dropout in eval mode == identity).
    Set donate_x=True ONLY if the caller donates x's buffer (jax.jit
    donate_argnums); then the output aliases x's HBM allocation.
    """
    if pe.ndim == 3 and pe.shape[1] == 1:
        pe = pe.reshape(pe.shape[0], pe.shape[2])    # squeeze legacy layout (free bitcast)
    S, B, D = x.shape
    assert pe.ndim == 2 and pe.shape[1] == D
    assert pe.shape[0] >= S, "sequence longer than max_len"
    assert pe.dtype == x.dtype, "build pe in the model dtype at init (make_positional_encoding(dtype=...))"

    vmem_limit = _scoped_vmem_limit_bytes()
    if seq_tile is None:
        seq_tile = _choose_seq_tile(S, B, D, x.dtype.itemsize, vmem_limit, pe.shape[0])
    grid = (pl.cdiv(S, seq_tile),)   # ragged last block handled by Pallas masking

    return pl.pallas_call(
        _pe_add_kernel,
        out_shape=jax.ShapeDtypeStruct((S, B, D), x.dtype),
        grid_spec=pltpu.PrefetchScalarGridSpec(
            num_scalar_prefetch=0,
            grid=grid,
            in_specs=[
                pl.BlockSpec((seq_tile, B, D), lambda i: (i, 0, 0)),
                # Full [padded_max_len, D] buffer: BlockSpec indexing reads only
                # the rows actually needed — no per-call slice/copy in HBM.
                pl.BlockSpec((seq_tile, D), lambda i: (i, 0)),
            ],
            out_specs=pl.BlockSpec((seq_tile, B, D), lambda i: (i, 0, 0)),
        ),
        # Alias x's HBM buffer with the output only when x is genuinely donated;
        # otherwise XLA would insert a defensive copy (or eager code would see
        # its x silently mutated).
        input_output_aliases=({0: 0} if donate_x else {}),
        compiler_params=pltpu.CompilerParams(
            dimension_semantics=("parallel",),
            vmem_limit_bytes=vmem_limit,
        ),
    )(x, pe)


if __name__ == "__main__":
    # Small shapes consistent with the module's forward: [seq_len, batch, d_model]
    seq_len, batch, d_model, max_len = 8, 2, 32, 64

    key = jax.random.PRNGKey(0)
    x = jax.random.normal(key, (seq_len, batch, d_model), dtype=jnp.float32)

    pe = make_positional_encoding(d_model, max_len=max_len, dtype=x.dtype)

    # Reference (pure JAX, eval-mode dropout == identity).
    ref = x + pe[:seq_len][:, None, :]

    out = positional_encoding_forward(x, pe)   # donate_x defaults to False: x untouched
    out = jax.block_until_ready(out)

    assert out.shape == (seq_len, batch, d_model)
    assert out.dtype == x.dtype
    assert jnp.allclose(out, ref, atol=1e-6, rtol=1e-6)

    print("KERNEL_OK")
</pallas_src>

<mosaic_0001>
module attributes {stable_mosaic.version = 11 : i64} {
  func.func @_pe_add_kernel(%arg0: i32, %arg1: memref<8x2x32xf32, #tpu.memory_space<vmem>>, %arg2: memref<8x32xf32, #tpu.memory_space<vmem>>, %arg3: memref<8x2x32xf32, #tpu.memory_space<vmem>>) attributes {dimension_semantics = [#tpu.dimension_semantics<parallel>], iteration_bounds = array<i64: 1>, scalar_prefetch = 0 : i64, scratch_operands = 0 : i64, tpu.core_type = #tpu.core_type<tc>, window_params = [{transform_indices = @transform_0, window_bounds = array<i64: 8, 2, 32>}, {transform_indices = @transform_1, window_bounds = array<i64: 8, 32>}, {transform_indices = @transform_2, window_bounds = array<i64: 8, 2, 32>}]} {
    %c0 = arith.constant 0 : index
    %c0_0 = arith.constant 0 : index
    %c0_1 = arith.constant 0 : index
    %0 = vector.load %arg1[%c0, %c0_0, %c0_1] : memref<8x2x32xf32, #tpu.memory_space<vmem>>, vector<8x2x32xf32>
    %c0_2 = arith.constant 0 : index
    %c0_3 = arith.constant 0 : index
    %1 = vector.load %arg2[%c0_2, %c0_3] : memref<8x32xf32, #tpu.memory_space<vmem>>, vector<8x32xf32>
    %2 = vector.shape_cast %1 : vector<8x32xf32> to vector<8x1x32xf32>
    %3 = vector.broadcast %2 : vector<8x1x32xf32> to vector<8x2x32xf32>
    %4 = arith.addf %0, %3 : vector<8x2x32xf32>
    %c0_4 = arith.constant 0 : index
    %c0_5 = arith.constant 0 : index
    %c0_6 = arith.constant 0 : index
    %5 = vector.load %arg3[%c0_4, %c0_5, %c0_6] : memref<8x2x32xf32, #tpu.memory_space<vmem>>, vector<8x2x32xf32>
    tpu.vector_store %arg3[%c0_4, %c0_5, %c0_6], %4 {strides = array<i32>} : memref<8x2x32xf32, #tpu.memory_space<vmem>>, vector<8x2x32xf32>,
    return
  }
  func.func @transform_0(%arg0: i32) -> (i32, i32, i32) {
    %c0_i32 = arith.constant 0 : i32
    %c0_i32_0 = arith.constant 0 : i32
    %c0_i32_1 = arith.constant 0 : i32
    return %arg0, %c0_i32, %c0_i32_0 : i32, i32, i32
  }
  func.func @transform_1(%arg0: i32) -> (i32, i32) {
    %c0_i32 = arith.constant 0 : i32
    %c0_i32_0 = arith.constant 0 : i32
    return %arg0, %c0_i32 : i32, i32
  }
  func.func @transform_2(%arg0: i32) -> (i32, i32, i32) {
    %c0_i32 = arith.constant 0 : i32
    %c0_i32_0 = arith.constant 0 : i32
    %c0_i32_1 = arith.constant 0 : i32
    return %arg0, %c0_i32, %c0_i32_0 : i32, i32, i32
  }
}

</mosaic_0001>

<bundles_post_ra>
// kernel: tpu_custom_call.1
= control target key start
LH: loop header
LB: loop body
LE: loop exit
PB: predicated region body
PF: predicated region fallthrough
CT: control target
= control target key end

     0   :  { %v26_v1 = vlaneseq  ;;  %v170_v2 = vmov 1966171168   ;;  %s227_s0 = inlined_call_operand.vmem [shape: f32[8,2,32], index: 0, kind: input, shape index: {}]   ;;  %s228_s1 = inlined_call_operand.vmem [shape: f32[64,32], index: 1, kind: input, shape index: {}]   ;;  %s229_s2 = inlined_call_operand.hbm [shape: f32[8,2,32], index: 2, kind: output, shape index: {}]  }
   0x1   :  { %v20_v0 = vld [vmem:[%s228_s1] sm:$0xff]  ;;  %v24_v3 = vunpack.c.l.s4 %v170_v2 }
   0x2   :  { %v27_v4 = vshrl.u32 %v26_v1, 7  ;;  %v22_v6 = vcombine.high %v20_v0, %v20_v0 }
   0x3   :  { %v25_v5 = vunpack.c.0.s8 %v24_v3 }
   0x4   :  { %7 = vsyncpa [#allocation3], 0  ;;  %v73_v9 = vsub.s32 0, %v27_v4  ;;  %v12_v15 = vld [vmem:[%s227_s0] sm:$0x3]  ;;  %vm119_vm0 = vcmask 254976  }
   0x5   :  { %v28_v7 = vsub.s32 %v25_v5, %v27_v4  ;;  %v16_v19 = vld [vmem:[%s227_s0 + $0x8] sm:$0x3]  ;;  %v13_v21 = vld [vmem:[%s227_s0 + $0x2] sm:$0x3]  ;;  %v14_v22 = vld [vmem:[%s227_s0 + $0x4] sm:$0x3] }
   0x6   :  { %v17_v29 = vld [vmem:[%s227_s0 + $0xa] sm:$0x3]  ;;  %v18_v30 = vld [vmem:[%s227_s0 + $0xc] sm:$0x3]  ;;  %v15_v31 = vld [vmem:[%s227_s0 + $0x6] sm:$0x3] }
   0x7   :  { %v29_v8 = vrot.slane %v20_v0, %v28_v7  ;;  %v36_v10 = vrot.slane %v22_v6, %v28_v7  ;;  %v19_v39 = vld [vmem:[%s227_s0 + $0xe] sm:$0x3]  ;;  %s171_s26 = smov [#allocation2]  }
   0x8   :  { %s133_s27 = sshll.u32 %s171_s26, 4  ;;  %s134_s27 = int_to_ptr.vmem [resolvable:$true] %s133_s27 }
   0x9   :  { %v45_v11 = vrot.slane %v29_v8, %v28_v7  ;;  %v37_v12 = vcombine.high %v29_v8, %v29_v8  ;;  %v52_v13 = vrot.slane %v36_v10, %v28_v7  ;;  %v38_v14 = vcombine.high %v36_v10, %v36_v10  ;;  %s148_s0 = scalar_lea.vmem %s134_s27, 256  ;;  %p153_p1 = scmp.lt.s32.totalorder %s134_s27, %s134_s27 }
   0xa   :  { %p149_p0 = scmp.ne.s32.totalorder %s134_s27, %s148_s0  ;;  %p154_p2 = scmp.lt.s32.totalorder %s148_s0, %s148_s0 }
   0xb   :  { %v74_v16 = vrot.slane %v45_v11, %v73_v9  ;;  %v59_v17 = vrot.slane %v37_v12, %v28_v7  ;;  %v67_v18 = vcombine.high %v45_v11, %v45_v11  ;;  %v90_v20 = vrot.slane %v52_v13, %v73_v9 }
   0xc   :  { %v66_v23 = vrot.slane %v38_v14, %v28_v7  ;;  %v68_v24 = vcombine.high %v52_v13, %v52_v13  ;;  %p155_p3 = por %p154_p2, %p153_p1 }
   0xd   :  { %v111_v25 = vadd.f32 %v74_v16, %v12_v15  ;;  %v78_v26 = vrot.slane %v59_v17, %v73_v9  ;;  %v82_v27 = vrot.slane %v67_v18, %v73_v9  ;;  %v69_v28 = vcombine.high %v59_v17, %v59_v17 }
   0xe   :  { %v115_v32 = vadd.f32 %v90_v20, %v16_v19  ;;  %v94_v33 = vrot.slane %v66_v23, %v73_v9  ;;  %v98_v34 = vrot.slane %v68_v24, %v73_v9  ;;  %v70_v35 = vcombine.high %v66_v23, %v66_v23  ;;  %p156_p4 = pnand %p155_p3, %p149_p0 }
   0xf   :  { %120 = vst.msk [vmem:[#allocation2] sm:$0x3] %vm119_vm0, %v111_v25  ;;  %v112_v36 = vadd.f32 %v78_v26, %v13_v21  ;;  %v113_v37 = vadd.f32 %v82_v27, %v14_v22  ;;  %v86_v38 = vrot.slane %v69_v28, %v73_v9 }
  0x10   :  { %124 = vst.msk [vmem:[#allocation2 + $0x8] sm:$0x3] %vm119_vm0, %v115_v32  ;;  %v116_v40 = vadd.f32 %v94_v33, %v17_v29  ;;  %v117_v41 = vadd.f32 %v98_v34, %v18_v30  ;;  %v102_v42 = vrot.slane %v70_v35, %v73_v9 }
  0x11   :  { %121 = vst.msk [vmem:[#allocation2 + $0x2] sm:$0x3] %vm119_vm0, %v112_v36  ;;  %122 = vst.msk [vmem:[#allocation2 + $0x4] sm:$0x3] %vm119_vm0, %v113_v37  ;;  %v114_v43 = vadd.f32 %v86_v38, %v15_v31 }
  0x12   :  { %125 = vst.msk [vmem:[#allocation2 + $0xa] sm:$0x3] %vm119_vm0, %v116_v40  ;;  %126 = vst.msk [vmem:[#allocation2 + $0xc] sm:$0x3] %vm119_vm0, %v117_v41  ;;  %v118_v44 = vadd.f32 %v102_v42, %v19_v39 }
  0x13   :  { %123 = vst.msk [vmem:[#allocation2 + $0x6] sm:$0x3] %vm119_vm0, %v114_v43 }
  0x14   :  { %127 = vst.msk [vmem:[#allocation2 + $0xe] sm:$0x3] %vm119_vm0, %v118_v44 }
  0x15   :  { %159 = shalt.err (!%p156_p4)
}
  0x16   :  { %s172_s28 = smov 32   ;;  %s173_s29 = smov 2  }
  0x17   :  { %139 = dma.vmem_to_hbm [thread:$0]  %s134_s27, 256, %s229_s2, [#allocation3], %s172_s28, %s172_s28, %s173_s29  }
  0x18   :  { %168 = dma.done.wait [#allocation3], 256  }
  0x19   :  { %169 = vsyncadd [#allocation3], 4294967040 }
  0x1a   :  { %143 = vsyncpa [#allocation3], 1 }

</bundles_post_ra>
